<compile_context>
chip_gen: v7x
topology: tpu7x:2x2x1
jax: 0.10.0
libtpu: 0.0.40
codegen_flags: <defaults>
</compile_context>

<pallas_src>
import functools

import jax
import jax.numpy as jnp
from jax.experimental import pallas as pl
from jax.experimental.pallas import tpu as pltpu


def _mean_kernel(x_ref, o_ref, acc_ref, *, inv_k, k_total, tk, mask_tail):
    k = pl.program_id(2)

    @pl.when(k == 0)
    def _init():
        acc_ref[...] = jnp.zeros_like(acc_ref)

    x = x_ref[...].astype(jnp.float32)                    # (tp, tk, tm)
    if mask_tail:
        # Last K-block may extend past the real reduction length: zero it.
        row = jax.lax.broadcasted_iota(jnp.int32, x.shape, dimension=1)
        x = jnp.where(row + k * tk < k_total, x, 0.0)
    acc_ref[...] += jnp.sum(x, axis=1, keepdims=True)      # (tp, 1, tm)

    @pl.when(k == pl.num_programs(2) - 1)
    def _finalize():
        o_ref[...] = (acc_ref[...] * inv_k).astype(o_ref.dtype)


def _choose_tiles(pre, K, post, *, target_elems=1 << 20):
    """Pick (tile_pre, tk, tile_post) so one input block is ~4 MiB of f32."""
    # --- lane (post) tile: multiple of 128, or the full (small) dim ---
    if post < 128:
        tile_post = post                       # full-dim exception
    elif post % 128 == 0:
        tile_post = min(post, 2048)
    else:
        tile_post = min((post // 128) * 128, 2048)   # ragged tail never stored
    # --- sublane (K) tile: whole K if it fits the budget, else multiple of 8 ---
    budget_rows = max(8, target_elems // max(tile_post, 1))
    if K <= budget_rows:
        tk = K                                 # full-dim exception
    else:
        tk = max(8, (min(budget_rows, 1024) // 8) * 8)
    # --- pre tile: only fatten blocks when the whole reduction fits in one ---
    if tk == K:
        tile_pre = max(1, min(pre, target_elems // max(1, tk * tile_post)))
    else:
        tile_pre = 1
    return tile_pre, tk, tile_post


def mean_all(x, dim, keepdim=False):
    """Pallas equivalent of torch.Tensor.mean(dim=dim, keepdim=keepdim)."""
    dim = dim % x.ndim
    K = x.shape[dim]
    pre = 1
    for s in x.shape[:dim]:
        pre *= s
    post = 1
    for s in x.shape[dim + 1:]:
        post *= s

    x3 = x.reshape(pre, K, post)               # free view, no data movement

    tile_pre, tk, tile_post = _choose_tiles(pre, K, post)
    grid = (pl.cdiv(pre, tile_pre), pl.cdiv(post, tile_post), pl.cdiv(K, tk))
    mask_tail = (K % tk) != 0

    kernel = functools.partial(
        _mean_kernel, inv_k=1.0 / K, k_total=K, tk=tk, mask_tail=mask_tail)

    out3 = pl.pallas_call(
        kernel,
        out_shape=jax.ShapeDtypeStruct((pre, 1, post), x.dtype),
        grid_spec=pltpu.PrefetchScalarGridSpec(
            num_scalar_prefetch=0,
            grid=grid,
            in_specs=[pl.BlockSpec((tile_pre, tk, tile_post),
                                   lambda p, j, k: (p, k, j))],
            out_specs=pl.BlockSpec((tile_pre, 1, tile_post),
                                   lambda p, j, k: (p, 0, j)),
            scratch_shapes=[pltpu.VMEM((tile_pre, 1, tile_post), jnp.float32)],
        ),
        compiler_params=pltpu.CompilerParams(
            dimension_semantics=("parallel", "parallel", "arbitrary"),
            vmem_limit_bytes=32 * 1024 * 1024,
        ),
    )(x3)

    # TODO(synk): integer inputs keep x.dtype here; torch.mean rejects ints.
    if keepdim:
        out_shape = x.shape[:dim] + (1,) + x.shape[dim + 1:]
    else:
        out_shape = x.shape[:dim] + x.shape[dim + 1:]
    return out3.reshape(out_shape)


if __name__ == "__main__":
    key = jax.random.PRNGKey(0)
    # NCHW-style input, reduce over the channel dim (dim=1)
    x = jax.random.normal(key, (2, 4, 16, 16), dtype=jnp.float32)

    dim, keepdim = 1, False
    y = jax.block_until_ready(mean_all(x, dim, keepdim))
    y_ref = jnp.mean(x, axis=dim, keepdims=keepdim)
    assert y.shape == y_ref.shape, (y.shape, y_ref.shape)
    assert jnp.allclose(y, y_ref, atol=1e-5, rtol=1e-5)

    # keepdim=True path (same kernel, different output reshape)
    y2 = jax.block_until_ready(mean_all(x, dim, True))
    y2_ref = jnp.mean(x, axis=dim, keepdims=True)
    assert y2.shape == y2_ref.shape, (y2.shape, y2_ref.shape)
    assert jnp.allclose(y2, y2_ref, atol=1e-5, rtol=1e-5)

    print("KERNEL_OK")
</pallas_src>

<mosaic_0001>
module attributes {stable_mosaic.version = 11 : i64} {
  func.func @_mean_kernel(%arg0: i32, %arg1: i32, %arg2: i32, %arg3: memref<2x4x256xf32, #tpu.memory_space<vmem>>, %arg4: memref<2x1x256xf32, #tpu.memory_space<vmem>>, %arg5: memref<2x1x256xf32, #tpu.memory_space<vmem>>) attributes {dimension_semantics = [#tpu.dimension_semantics<parallel>, #tpu.dimension_semantics<parallel>, #tpu.dimension_semantics<arbitrary>], iteration_bounds = array<i64: 1, 1, 1>, scalar_prefetch = 0 : i64, scratch_operands = 1 : i64, tpu.core_type = #tpu.core_type<tc>, window_params = [{transform_indices = @transform_0, window_bounds = array<i64: 2, 4, 256>}, {transform_indices = @transform_1, window_bounds = array<i64: 2, 1, 256>}]} {
    %c0_i32 = arith.constant 0 : i32
    %0 = arith.cmpi eq, %arg2, %c0_i32 : i32
    %1 = arith.extui %0 : i1 to i32
    %c0_i32_0 = arith.constant 0 : i32
    %2 = arith.cmpi ne, %1, %c0_i32_0 : i32
    scf.if %2 {
      %cst_11 = arith.constant 0.000000e+00 : f32
      %12 = vector.broadcast %cst_11 : f32 to vector<2x1x256xf32>
      %c0_12 = arith.constant 0 : index
      %c0_13 = arith.constant 0 : index
      %c0_14 = arith.constant 0 : index
      %13 = vector.load %arg5[%c0_12, %c0_13, %c0_14] : memref<2x1x256xf32, #tpu.memory_space<vmem>>, vector<2x1x256xf32>
      tpu.vector_store %arg5[%c0_12, %c0_13, %c0_14], %12 {strides = array<i32>} : memref<2x1x256xf32, #tpu.memory_space<vmem>>, vector<2x1x256xf32>,
    } else {
    }
    %c0 = arith.constant 0 : index
    %c0_1 = arith.constant 0 : index
    %c0_2 = arith.constant 0 : index
    %3 = vector.load %arg3[%c0, %c0_1, %c0_2] : memref<2x4x256xf32, #tpu.memory_space<vmem>>, vector<2x4x256xf32>
    %c0_3 = arith.constant 0 : index
    %c0_4 = arith.constant 0 : index
    %c0_5 = arith.constant 0 : index
    %4 = vector.load %arg5[%c0_3, %c0_4, %c0_5] : memref<2x1x256xf32, #tpu.memory_space<vmem>>, vector<2x1x256xf32>
    %cst = arith.constant dense<0.000000e+00> : vector<2x256xf32>
    %5 = vector.multi_reduction <add>, %3, %cst [1] : vector<2x4x256xf32> to vector<2x256xf32>
    %6 = vector.shape_cast %5 : vector<2x256xf32> to vector<2x1x256xf32>
    %7 = arith.addf %4, %6 : vector<2x1x256xf32>
    %c0_6 = arith.constant 0 : index
    %c0_7 = arith.constant 0 : index
    %c0_8 = arith.constant 0 : index
    %8 = vector.load %arg5[%c0_6, %c0_7, %c0_8] : memref<2x1x256xf32, #tpu.memory_space<vmem>>, vector<2x1x256xf32>
    tpu.vector_store %arg5[%c0_6, %c0_7, %c0_8], %7 {strides = array<i32>} : memref<2x1x256xf32, #tpu.memory_space<vmem>>, vector<2x1x256xf32>,
    %c0_i32_9 = arith.constant 0 : i32
    %9 = arith.cmpi eq, %arg2, %c0_i32_9 : i32
    %10 = arith.extui %9 : i1 to i32
    %c0_i32_10 = arith.constant 0 : i32
    %11 = arith.cmpi ne, %10, %c0_i32_10 : i32
    scf.if %11 {
      %c0_11 = arith.constant 0 : index
      %c0_12 = arith.constant 0 : index
      %c0_13 = arith.constant 0 : index
      %12 = vector.load %arg5[%c0_11, %c0_12, %c0_13] : memref<2x1x256xf32, #tpu.memory_space<vmem>>, vector<2x1x256xf32>
      %cst_14 = arith.constant 2.500000e-01 : f32
      %13 = vector.broadcast %cst_14 : f32 to vector<2x1x256xf32>
      %14 = arith.mulf %12, %13 : vector<2x1x256xf32>
      %c0_15 = arith.constant 0 : index
      %c0_16 = arith.constant 0 : index
      %c0_17 = arith.constant 0 : index
      %15 = vector.load %arg4[%c0_15, %c0_16, %c0_17] : memref<2x1x256xf32, #tpu.memory_space<vmem>>, vector<2x1x256xf32>
      tpu.vector_store %arg4[%c0_15, %c0_16, %c0_17], %14 {strides = array<i32>} : memref<2x1x256xf32, #tpu.memory_space<vmem>>, vector<2x1x256xf32>,
    } else {
    }
    return
  }
  func.func @transform_0(%arg0: i32, %arg1: i32, %arg2: i32) -> (i32, i32, i32) {
    %c0_i32 = arith.constant 0 : i32
    return %arg0, %arg2, %arg1 : i32, i32, i32
  }
  func.func @transform_1(%arg0: i32, %arg1: i32, %arg2: i32) -> (i32, i32, i32) {
    %c0_i32 = arith.constant 0 : i32
    %c0_i32_0 = arith.constant 0 : i32
    return %arg0, %c0_i32, %arg1 : i32, i32, i32
  }
}

</mosaic_0001>

<bundles_post_ra>
// kernel: tpu_custom_call.1
= control target key start
LH: loop header
LB: loop body
LE: loop exit
PB: predicated region body
PF: predicated region fallthrough
CT: control target
= control target key end

     0   :  { %6 = vsyncpa [#allocation4], 0  ;;  %s258_s0 = inlined_call_operand.hbm [shape: f32[2,4,256], index: 0, kind: input, shape index: {}]   ;;  %s259_s1 = inlined_call_operand.hbm [shape: f32[2,1,256], index: 1, kind: output, shape index: {}]  }
   0x1   :  { %7 = vsyncpa [#allocation5], 0  ;;  %s200_s6 = smov [#allocation3]   ;;  %s152_s10 = scalar_lea.hbm %s258_s0, 256 }
   0x2   :  { %s13_s7 = sshll.u32 %s200_s6, 4  ;;  %p153_p0 = scmp.ne.s32.totalorder %s258_s0, %s152_s10  ;;  %s14_s7 = int_to_ptr.vmem [resolvable:$true] %s13_s7 }
   0x3   :  { %p156_p1 = scmp.lt.u32.totalorder %s152_s10, %s258_s0 }
   0x5   :  { %p158_p2 = pnand %p156_p1, %p153_p0 }
   0x7   :  { %161 = shalt.err (!%p158_p2)
}
   0x8   :  { %s162_s15 = scalar_lea.vmem %s14_s7, 256  ;;  %p167_p4 = scmp.lt.s32.totalorder %s14_s7, %s14_s7 }
   0x9   :  { %p163_p3 = scmp.ne.s32.totalorder %s14_s7, %s162_s15  ;;  %p168_p5 = scmp.lt.s32.totalorder %s162_s15, %s162_s15 }
   0xb   :  { %p169_p6 = por %p168_p5, %p167_p4 }
   0xd   :  { %p170_p7 = pnand %p169_p6, %p163_p3 }
   0xf   :  { %173 = shalt.err (!%p170_p7)
}
  0x10   :  { %s201_s16 = smov 128   ;;  %s202_s17 = smov 8  }
  0x11   :  { %19 = dma.hbm_to_vmem [thread:$0]  %s258_s0, 256, %s14_s7, [#allocation4], %s201_s16, %s201_s16, %s202_s17  }
  0x12   :  { %196 = dma.done.wait [#allocation4], 256  }
  0x13   :  { %197 = vsyncadd [#allocation4], 4294967040  ;;  %v27_v0 = vlaneseq  ;;  %v203_v2 = vmov 0.0   ;;  %vm43_vm1 = vcmask 1043456   ;;  %v33_v3 = vld [vmem:[#allocation3] sm:$0xff]  ;;  %v34_v4 = vld [vmem:[#allocation3 + $0x8] sm:$0xff] }
  0x14   :  { %v39_v5 = vcombine.high %v33_v3, %v33_v3  ;;  %v44_v6 = vsel %vm43_vm1, %v33_v3, 0.0  ;;  %v40_v7 = vcombine.high %v34_v4, %v34_v4  ;;  %v58_v8 = vsel %vm43_vm1, %v34_v4, 0.0  ;;  %s205_s0 = smov [#allocation6]  }
  0x15   :  { %vm230_vm0 = vcmp.lt.s32.totalorder %v27_v0, 256  ;;  %v45_v9 = vrot.slane %v44_v6, 4  ;;  %v59_v10 = vrot.slane %v58_v8, 4  ;;  %v204_v17 = vmov 1966171168   ;;  %s130_s20 = sshll.u32 %s205_s0, 4  ;;  %s131_s20 = int_to_ptr.vmem [resolvable:$true] %s130_s20 }
  0x16   :  { %31 = vst.msk [vmem:[#allocation2] sm:$0x3] %vm230_vm0, %v203_v2  ;;  %32 = vst.msk [vmem:[#allocation2 + $0x2] sm:$0x3] %vm230_vm0, %v203_v2  ;;  %v51_v11 = vsel %vm43_vm1, %v39_v5, 0.0  ;;  %v65_v12 = vsel %vm43_vm1, %v40_v7, 0.0  ;;  %v78_v18 = vunpack.c.l.s4 %v204_v17  ;;  %p179_p9 = scmp.lt.s32.totalorder %s131_s20, %s131_s20 }
  0x17   :  { %v46_v13 = vadd.f32 %v45_v9, %v44_v6  ;;  %v52_v14 = vrot.slane %v51_v11, 4  ;;  %v60_v15 = vadd.f32 %v59_v10, %v58_v8  ;;  %v66_v16 = vrot.slane %v65_v12, 4  ;;  %s174_s21 = scalar_lea.vmem %s131_s20, 64 }
  0x18   :  { %v79_v27 = vunpack.c.0.s8 %v78_v18  ;;  %v81_v28 = vshrl.u32 %v27_v0, 7  ;;  %p175_p8 = scmp.ne.s32.totalorder %s131_s20, %s174_s21  ;;  %p180_p10 = scmp.lt.s32.totalorder %s174_s21, %s174_s21 }
  0x19   :  { %v47_v19 = vrot.slane %v46_v13, 2  ;;  %v53_v20 = vadd.f32 %v52_v14, %v51_v11  ;;  %v61_v21 = vrot.slane %v60_v15, 2  ;;  %v67_v22 = vadd.f32 %v66_v16, %v65_v12 }
  0x1a   :  { %v82_v37 = vsub.s32 %v79_v27, %v81_v28  ;;  %p181_p11 = por %p180_p10, %p179_p9 }
  0x1b   :  { %v48_v23 = vadd.f32 %v47_v19, %v46_v13  ;;  %v54_v24 = vrot.slane %v53_v20, 2  ;;  %v62_v25 = vadd.f32 %v61_v21, %v60_v15  ;;  %v68_v26 = vrot.slane %v67_v22, 2 }
  0x1c   :  { %p182_p12 = pnand %p181_p11, %p175_p8 }
  0x1d   :  { %v49_v29 = vrot.slane %v48_v23, 1  ;;  %v55_v30 = vadd.f32 %v54_v24, %v53_v20  ;;  %v63_v31 = vrot.slane %v62_v25, 1  ;;  %v69_v32 = vadd.f32 %v68_v26, %v67_v22  ;;  %v35_v44 = vld [vmem:[#allocation2] sm:$0x3]  ;;  %v36_v45 = vld [vmem:[#allocation2 + $0x2] sm:$0x3] }
  0x1f   :  { %v50_v33 = vadd.f32 %v49_v29, %v48_v23  ;;  %v56_v34 = vrot.slane %v55_v30, 1  ;;  %v64_v35 = vadd.f32 %v63_v31, %v62_v25  ;;  %v70_v36 = vrot.slane %v69_v32, 1 }
  0x21   :  { %v57_v38 = vadd.f32 %v56_v34, %v55_v30  ;;  %v71_v39 = vadd.f32 %v70_v36, %v69_v32 }
  0x23   :  { %v76_v40 = vcombine.low %v50_v33, %v57_v38  ;;  %v91_v41 = vcombine.low %v64_v35, %v71_v39 }
  0x25   :  { %v83_v42 = vrot.slane %v76_v40, %v82_v37  ;;  %v98_v43 = vrot.slane %v91_v41, %v82_v37 }
  0x27   :  { %v90_v46 = vrot.slane %v83_v42, %v82_v37  ;;  %v105_v47 = vrot.slane %v98_v43, %v82_v37 }
  0x29   :  { %v108_v48 = vadd.f32 %v90_v46, %v35_v44  ;;  %v109_v49 = vadd.f32 %v105_v47, %v36_v45 }
  0x2b   :  { %114 = vst.msk [vmem:[#allocation2] sm:$0x3] %vm230_vm0, %v108_v48  ;;  %115 = vst.msk [vmem:[#allocation2 + $0x2] sm:$0x3] %vm230_vm0, %v109_v49 }
  0x32   :  { %v119_v50 = vld [vmem:[#allocation2] sm:$0x3]  ;;  %v120_v51 = vld [vmem:[#allocation2 + $0x2] sm:$0x3] }
  0x33   :  { %v121_v52 = vmul.f32 0.25, %v119_v50  ;;  %v122_v53 = vmul.f32 0.25, %v120_v51 }
  0x35   :  { %123 = vst.msk [vmem:[#allocation6] sm:$0x3] %vm230_vm0, %v121_v52  ;;  %124 = vst.msk [vmem:[#allocation6 + $0x2] sm:$0x3] %vm230_vm0, %v122_v53 }
  0x36   :  { %185 = shalt.err (!%p182_p12)
}
  0x37   :  { %s186_s24 = scalar_lea.hbm %s259_s1, 64 }
  0x38   :  { %p187_p13 = scmp.ne.s32.totalorder %s259_s1, %s186_s24  ;;  %p190_p0 = scmp.lt.u32.totalorder %s186_s24, %s259_s1 }
  0x3a   :  { %p192_p1 = pnand %p190_p0, %p187_p13 }
  0x3c   :  { %195 = shalt.err (!%p192_p1)
}
  0x3d   :  { %s206_s29 = smov 32   ;;  %s207_s30 = smov 2  }
  0x3e   :  { %136 = dma.vmem_to_hbm [thread:$0]  %s131_s20, 64, %s259_s1, [#allocation5], %s206_s29, %s206_s29, %s207_s30  }
  0x3f   :  { %198 = dma.done.wait [#allocation5], 64  }
  0x40   :  { %199 = vsyncadd [#allocation5], 4294967232 }
  0x41   :  { %140 = vsyncpa [#allocation4], 1 }
  0x42   :  { %141 = vsyncpa [#allocation5], 1 }

</bundles_post_ra>
